<compile_context>
chip_gen: v7x
topology: tpu7x:2x2x1
jax: 0.10.0
libtpu: 0.0.40
codegen_flags: <defaults>
</compile_context>

<pallas_src>
import functools

import jax
import jax.numpy as jnp
from jax.experimental import pallas as pl
from jax.experimental.pallas import tpu as pltpu


def _round_up(x, m):
    return -(-x // m) * m


def _channel_block(lo, hi, c, sublane):
    """Smallest legal channel block covering channels [lo, hi).

    Returns (block_size, block_index, local_offset): a Blocked channel block of
    `block_size` (a sublane multiple, or the full dim c) at `block_index`
    contains [lo, hi); `local_offset = lo - block_index * block_size` is the
    static in-block offset of the first needed channel.
    """
    assert 0 <= lo < hi <= c
    bs = min(_round_up(hi - lo, sublane), c)
    while bs < c:
        k = lo // bs
        if k * bs + bs >= hi:
            return bs, k, lo - k * bs
        bs += sublane
    return c, 0, lo


def _vmem_capacity_bytes():
    """Generation-aware VMEM capacity; conservative 64 MiB fallback (v7x)."""
    try:
        info = pltpu.get_tpu_info()
        for name in ("vmem_capacity_bytes", "vmem_bytes", "vmem_size_bytes"):
            cap = getattr(info, name, None)
            if cap:
                return int(cap)
    except Exception:
        pass
    return 64 * 1024 * 1024


def _pick_hw_block(hw, per_lane_bytes, budget_bytes):
    """Lane-block size: full hw if it fits the budget, else a 128-multiple tile."""
    if hw <= 128 or hw * per_lane_bytes <= budget_bytes:
        return hw  # full spatial extent is always a legal lane block
    blk = (budget_bytes // per_lane_bytes) // 128 * 128
    blk = max(blk, 128)
    return min(blk, hw)


def _tsm_kernel(*refs, fold, g2_end, c, prev_local, cur_local,
                has_prev, has_cur, seg_axis):
    """One (hw-chunk, batch, segment) tile.

    refs = (next_ref, [prev_ref], [cur_ref], out_ref)
      next_ref : (next_bs, hw_blk) channel block covering [0, fold)
      prev_ref : (prev_bs, hw_blk) channel block covering [fold, g2_end)
      cur_ref  : (cur_bs,  hw_blk) channel block covering [g2_end, c)
      out_ref  : (c, hw_blk)
    """
    out_ref = refs[-1]
    next_ref = refs[0]
    idx = 1
    prev_ref = None
    cur_ref = None
    if has_prev:
        prev_ref = refs[idx]
        idx += 1
    if has_cur:
        cur_ref = refs[idx]
        idx += 1

    t = pl.program_id(seg_axis)
    n_seg = pl.num_programs(seg_axis)
    hw_blk = out_ref.shape[-1]

    # Pass-through channels [g2_end:c] from the current segment.
    if has_cur:
        out_ref[g2_end:c, :] = cur_ref[cur_local:cur_local + (c - g2_end), :]

    # Channels [0:fold] come from the *next* segment (zero at the last one).
    @pl.when(t < n_seg - 1)
    def _():
        out_ref[0:fold, :] = next_ref[0:fold, :]

    @pl.when(t == n_seg - 1)
    def _():
        out_ref[0:fold, :] = jnp.zeros((fold, hw_blk), out_ref.dtype)

    # Channels [fold:g2_end] come from the *previous* segment (zero at the first).
    if has_prev:
        g2 = g2_end - fold

        @pl.when(t > 0)
        def _():
            out_ref[fold:g2_end, :] = prev_ref[prev_local:prev_local + g2, :]

        @pl.when(t == 0)
        def _():
            out_ref[fold:g2_end, :] = jnp.zeros((g2, hw_blk), out_ref.dtype)


def tsm_forward(x, n_segment=20, fold_div=3):
    """x: (nt, c, h, w) array, nt divisible by n_segment."""
    nt, c, h, w = x.shape
    assert nt % n_segment == 0, "nt must be divisible by n_segment"
    n_batch = nt // n_segment
    fold = c // fold_div
    hw = h * w

    if fold == 0:
        # Reference reduces to out[:, :, 0:] = x -> identity.
        return x

    itemsize = jnp.dtype(x.dtype).itemsize
    sublane = max(1, 32 // itemsize)  # 8 for f32, 16 for bf16, 32 for int8

    # Channel groups (guarded for fold_div == 1, where 2*fold > c).
    g2_end = min(2 * fold, c)
    has_prev = g2_end > fold
    has_cur = g2_end < c

    next_bs, next_k, _ = _channel_block(0, fold, c, sublane)
    prev_bs = prev_k = prev_local = 0
    if has_prev:
        prev_bs, prev_k, prev_local = _channel_block(fold, g2_end, c, sublane)
    cur_bs = cur_k = cur_local = 0
    if has_cur:
        cur_bs, cur_k, cur_local = _channel_block(g2_end, c, c, sublane)

    x5 = x.reshape(n_batch, n_segment, c, hw)

    read_c = next_bs + (prev_bs if has_prev else 0) + (cur_bs if has_cur else 0)

    # Double-buffered tile-set budget and scoped VMEM limit from the actual chip.
    vmem_cap = _vmem_capacity_bytes()
    budget = min(24 * 1024 * 1024, vmem_cap // 4)      # 16 MiB v7x, 24 MiB v5e/v6e
    vmem_limit = int(min(vmem_cap, max(32 * 1024 * 1024, vmem_cap // 2)))
    per_lane_bytes = (c + read_c) * itemsize * 2        # all streams, 2 buffers
    hw_blk = _pick_hw_block(hw, per_lane_bytes, budget)
    n_hw = pl.cdiv(hw, hw_blk)
    last_t = n_segment - 1

    def blk(cs):
        return (pl.Squeezed(), pl.Squeezed(), cs, hw_blk)

    out_spec = pl.BlockSpec(blk(c), lambda s, b, t: (b, t, 0, s))
    next_spec = pl.BlockSpec(
        blk(next_bs), lambda s, b, t: (b, jnp.minimum(t + 1, last_t), next_k, s))
    in_specs = [next_spec]
    operands = [x5]
    if has_prev:
        prev_spec = pl.BlockSpec(
            blk(prev_bs), lambda s, b, t: (b, jnp.maximum(t - 1, 0), prev_k, s))
        in_specs.append(prev_spec)
        operands.append(x5)
    if has_cur:
        cur_spec = pl.BlockSpec(blk(cur_bs), lambda s, b, t: (b, t, cur_k, s))
        in_specs.append(cur_spec)
        operands.append(x5)

    # Memory-bound custom call: tell XLA's scheduler the (reduced) bytes moved.
    bytes_accessed = n_batch * n_segment * hw * (read_c + c) * itemsize
    cost = pl.CostEstimate(flops=0, transcendentals=0, bytes_accessed=bytes_accessed)

    kernel = functools.partial(
        _tsm_kernel, fold=fold, g2_end=g2_end, c=c,
        prev_local=prev_local, cur_local=cur_local,
        has_prev=has_prev, has_cur=has_cur, seg_axis=2)

    out5 = pl.pallas_call(
        kernel,
        out_shape=jax.ShapeDtypeStruct((n_batch, n_segment, c, hw), x.dtype),
        grid_spec=pltpu.PrefetchScalarGridSpec(
            num_scalar_prefetch=0,
            grid=(n_hw, n_batch, n_segment),
            in_specs=in_specs,
            out_specs=out_spec,
        ),
        compiler_params=pltpu.CompilerParams(
            dimension_semantics=("parallel", "parallel", "arbitrary"),
            vmem_limit_bytes=vmem_limit,
        ),
        cost_estimate=cost,
    )(*operands)

    return out5.reshape(nt, c, h, w)


def tsm_reference(x, n_segment=20, fold_div=3):
    """Pure-JAX reference mirroring the PyTorch module."""
    nt, c, h, w = x.shape
    n_batch = nt // n_segment
    x5 = x.reshape(n_batch, n_segment, c, h, w)
    fold = c // fold_div
    out = jnp.zeros_like(x5)
    out = out.at[:, :-1, :fold].set(x5[:, 1:, :fold])
    out = out.at[:, 1:, fold:2 * fold].set(x5[:, :-1, fold:2 * fold])
    out = out.at[:, :, 2 * fold:].set(x5[:, :, 2 * fold:])
    return out.reshape(nt, c, h, w)


if __name__ == "__main__":
    key = jax.random.PRNGKey(0)
    n_segment = 8
    n_batch = 2
    nt = n_segment * n_batch

    cases = [
        # (c, h, w, fold_div, dtype)
        (24, 16, 16, 3, jnp.float32),   # sublane-aligned fold -> minimal channel blocks
        (20, 12, 12, 3, jnp.float32),   # misaligned fold + hw not multiple of 128
        (6, 16, 16, 3, jnp.float32),    # tiny C -> full-channel fallback blocks
        (48, 16, 16, 3, jnp.bfloat16),  # bf16 (sublane pack 16), aligned fold
        (8, 16, 16, 1, jnp.float32),    # fold_div=1 -> only the "next" group exists
    ]
    for c, h, w, fold_div, dtype in cases:
        key, sub = jax.random.split(key)
        x = jax.random.normal(sub, (nt, c, h, w), dtype=jnp.float32).astype(dtype)
        out = jax.block_until_ready(
            tsm_forward(x, n_segment=n_segment, fold_div=fold_div))
        ref = tsm_reference(x, n_segment=n_segment, fold_div=fold_div)
        assert out.shape == x.shape
        assert jnp.array_equal(out, ref), (
            f"mismatch vs reference for c={c}, fold_div={fold_div}, dtype={dtype}")

    print("KERNEL_OK")
</pallas_src>

<mosaic_0001>
module attributes {stable_mosaic.version = 11 : i64} {
  func.func @_tsm_kernel(%arg0: i32, %arg1: i32, %arg2: i32, %arg3: memref<1x1x8x256xf32, #tpu.memory_space<vmem>>, %arg4: memref<1x1x8x256xf32, #tpu.memory_space<vmem>>, %arg5: memref<1x1x8x256xf32, #tpu.memory_space<vmem>>, %arg6: memref<1x1x24x256xf32, #tpu.memory_space<vmem>>) attributes {dimension_semantics = [#tpu.dimension_semantics<parallel>, #tpu.dimension_semantics<parallel>, #tpu.dimension_semantics<arbitrary>], iteration_bounds = array<i64: 1, 2, 8>, scalar_prefetch = 0 : i64, scratch_operands = 0 : i64, tpu.core_type = #tpu.core_type<tc>, window_params = [{transform_indices = @transform_0, window_bounds = array<i64: 1, 1, 8, 256>}, {transform_indices = @transform_1, window_bounds = array<i64: 1, 1, 8, 256>}, {transform_indices = @transform_2, window_bounds = array<i64: 1, 1, 8, 256>}, {transform_indices = @transform_3, window_bounds = array<i64: 1, 1, 24, 256>}]} {
    %c0 = arith.constant 0 : index
    %c0_0 = arith.constant 0 : index
    %c0_1 = arith.constant 0 : index
    %c0_2 = arith.constant 0 : index
    %0 = vector.load %arg5[%c0, %c0_0, %c0_1, %c0_2] : memref<1x1x8x256xf32, #tpu.memory_space<vmem>>, vector<1x1x8x256xf32>
    %1 = vector.shape_cast %0 : vector<1x1x8x256xf32> to vector<8x256xf32>
    %c0_3 = arith.constant 0 : index
    %c0_4 = arith.constant 0 : index
    %c16 = arith.constant 16 : index
    %c0_5 = arith.constant 0 : index
    %2 = vector.load %arg6[%c0_3, %c0_4, %c16, %c0_5] : memref<1x1x24x256xf32, #tpu.memory_space<vmem>>, vector<1x1x8x256xf32>
    %3 = vector.shape_cast %2 : vector<1x1x8x256xf32> to vector<8x256xf32>
    %4 = vector.shape_cast %1 : vector<8x256xf32> to vector<1x1x8x256xf32>
    tpu.vector_store %arg6[%c0_3, %c0_4, %c16, %c0_5], %4 {strides = array<i32>} : memref<1x1x24x256xf32, #tpu.memory_space<vmem>>, vector<1x1x8x256xf32>,
    %c7_i32 = arith.constant 7 : i32
    %5 = arith.cmpi slt, %arg2, %c7_i32 : i32
    %6 = arith.extui %5 : i1 to i32
    %c0_i32 = arith.constant 0 : i32
    %7 = arith.cmpi ne, %6, %c0_i32 : i32
    scf.if %7 {
      %c0_12 = arith.constant 0 : index
      %c0_13 = arith.constant 0 : index
      %c0_14 = arith.constant 0 : index
      %c0_15 = arith.constant 0 : index
      %17 = vector.load %arg3[%c0_12, %c0_13, %c0_14, %c0_15] : memref<1x1x8x256xf32, #tpu.memory_space<vmem>>, vector<1x1x8x256xf32>
      %18 = vector.shape_cast %17 : vector<1x1x8x256xf32> to vector<8x256xf32>
      %c0_16 = arith.constant 0 : index
      %c0_17 = arith.constant 0 : index
      %c0_18 = arith.constant 0 : index
      %c0_19 = arith.constant 0 : index
      %19 = vector.load %arg6[%c0_16, %c0_17, %c0_18, %c0_19] : memref<1x1x24x256xf32, #tpu.memory_space<vmem>>, vector<1x1x8x256xf32>
      %20 = vector.shape_cast %19 : vector<1x1x8x256xf32> to vector<8x256xf32>
      %21 = vector.shape_cast %18 : vector<8x256xf32> to vector<1x1x8x256xf32>
      tpu.vector_store %arg6[%c0_16, %c0_17, %c0_18, %c0_19], %21 {strides = array<i32>} : memref<1x1x24x256xf32, #tpu.memory_space<vmem>>, vector<1x1x8x256xf32>,
    } else {
    }
    %c7_i32_6 = arith.constant 7 : i32
    %8 = arith.cmpi eq, %arg2, %c7_i32_6 : i32
    %9 = arith.extui %8 : i1 to i32
    %c0_i32_7 = arith.constant 0 : i32
    %10 = arith.cmpi ne, %9, %c0_i32_7 : i32
    scf.if %10 {
      %cst = arith.constant 0.000000e+00 : f32
      %17 = vector.broadcast %cst : f32 to vector<8x256xf32>
      %c0_12 = arith.constant 0 : index
      %c0_13 = arith.constant 0 : index
      %c0_14 = arith.constant 0 : index
      %c0_15 = arith.constant 0 : index
      %18 = vector.load %arg6[%c0_12, %c0_13, %c0_14, %c0_15] : memref<1x1x24x256xf32, #tpu.memory_space<vmem>>, vector<1x1x8x256xf32>
      %19 = vector.shape_cast %18 : vector<1x1x8x256xf32> to vector<8x256xf32>
      %20 = vector.shape_cast %17 : vector<8x256xf32> to vector<1x1x8x256xf32>
      tpu.vector_store %arg6[%c0_12, %c0_13, %c0_14, %c0_15], %20 {strides = array<i32>} : memref<1x1x24x256xf32, #tpu.memory_space<vmem>>, vector<1x1x8x256xf32>,
    } else {
    }
    %c0_i32_8 = arith.constant 0 : i32
    %11 = arith.cmpi sgt, %arg2, %c0_i32_8 : i32
    %12 = arith.extui %11 : i1 to i32
    %c0_i32_9 = arith.constant 0 : i32
    %13 = arith.cmpi ne, %12, %c0_i32_9 : i32
    scf.if %13 {
      %c0_12 = arith.constant 0 : index
      %c0_13 = arith.constant 0 : index
      %c0_14 = arith.constant 0 : index
      %c0_15 = arith.constant 0 : index
      %17 = vector.load %arg4[%c0_12, %c0_13, %c0_14, %c0_15] : memref<1x1x8x256xf32, #tpu.memory_space<vmem>>, vector<1x1x8x256xf32>
      %18 = vector.shape_cast %17 : vector<1x1x8x256xf32> to vector<8x256xf32>
      %c0_16 = arith.constant 0 : index
      %c0_17 = arith.constant 0 : index
      %c8 = arith.constant 8 : index
      %c0_18 = arith.constant 0 : index
      %19 = vector.load %arg6[%c0_16, %c0_17, %c8, %c0_18] : memref<1x1x24x256xf32, #tpu.memory_space<vmem>>, vector<1x1x8x256xf32>
      %20 = vector.shape_cast %19 : vector<1x1x8x256xf32> to vector<8x256xf32>
      %21 = vector.shape_cast %18 : vector<8x256xf32> to vector<1x1x8x256xf32>
      tpu.vector_store %arg6[%c0_16, %c0_17, %c8, %c0_18], %21 {strides = array<i32>} : memref<1x1x24x256xf32, #tpu.memory_space<vmem>>, vector<1x1x8x256xf32>,
    } else {
    }
    %c0_i32_10 = arith.constant 0 : i32
    %14 = arith.cmpi eq, %arg2, %c0_i32_10 : i32
    %15 = arith.extui %14 : i1 to i32
    %c0_i32_11 = arith.constant 0 : i32
    %16 = arith.cmpi ne, %15, %c0_i32_11 : i32
    scf.if %16 {
      %cst = arith.constant 0.000000e+00 : f32
      %17 = vector.broadcast %cst : f32 to vector<8x256xf32>
      %c0_12 = arith.constant 0 : index
      %c0_13 = arith.constant 0 : index
      %c8 = arith.constant 8 : index
      %c0_14 = arith.constant 0 : index
      %18 = vector.load %arg6[%c0_12, %c0_13, %c8, %c0_14] : memref<1x1x24x256xf32, #tpu.memory_space<vmem>>, vector<1x1x8x256xf32>
      %19 = vector.shape_cast %18 : vector<1x1x8x256xf32> to vector<8x256xf32>
      %20 = vector.shape_cast %17 : vector<8x256xf32> to vector<1x1x8x256xf32>
      tpu.vector_store %arg6[%c0_12, %c0_13, %c8, %c0_14], %20 {strides = array<i32>} : memref<1x1x24x256xf32, #tpu.memory_space<vmem>>, vector<1x1x8x256xf32>,
    } else {
    }
    return
  }
  func.func @transform_0(%arg0: i32, %arg1: i32, %arg2: i32) -> (i32, i32, i32, i32) {
    %c1_i32 = arith.constant 1 : i32
    %0 = arith.addi %arg2, %c1_i32 : i32
    %c7_i32 = arith.constant 7 : i32
    %1 = arith.minsi %0, %c7_i32 : i32
    %c0_i32 = arith.constant 0 : i32
    %c0_i32_0 = arith.constant 0 : i32
    return %arg1, %1, %c0_i32, %arg0 : i32, i32, i32, i32
  }
  func.func @transform_1(%arg0: i32, %arg1: i32, %arg2: i32) -> (i32, i32, i32, i32) {
    %c1_i32 = arith.constant 1 : i32
    %0 = arith.subi %arg2, %c1_i32 : i32
    %c0_i32 = arith.constant 0 : i32
    %1 = arith.maxsi %0, %c0_i32 : i32
    %c1_i32_0 = arith.constant 1 : i32
    %c0_i32_1 = arith.constant 0 : i32
    return %arg1, %1, %c1_i32_0, %arg0 : i32, i32, i32, i32
  }
  func.func @transform_2(%arg0: i32, %arg1: i32, %arg2: i32) -> (i32, i32, i32, i32) {
    %c2_i32 = arith.constant 2 : i32
    %c0_i32 = arith.constant 0 : i32
    return %arg1, %arg2, %c2_i32, %arg0 : i32, i32, i32, i32
  }
  func.func @transform_3(%arg0: i32, %arg1: i32, %arg2: i32) -> (i32, i32, i32, i32) {
    %c0_i32 = arith.constant 0 : i32
    %c0_i32_0 = arith.constant 0 : i32
    return %arg1, %arg2, %c0_i32, %arg0 : i32, i32, i32, i32
  }
}

</mosaic_0001>

<bundles_post_ra>
// kernel: tpu_custom_call.1
= control target key start
LH: loop header
LB: loop body
LE: loop exit
PB: predicated region body
PF: predicated region fallthrough
CT: control target
= control target key end

     0   :  { %s1418_s0 = inlined_call_operand.hbm [shape: f32[2,8,24,256], index: 0, kind: input, shape index: {}]   ;;  %s1419_s1 = inlined_call_operand.hbm [shape: f32[2,8,24,256], index: 1, kind: input, shape index: {}]   ;;  %s1420_s2 = inlined_call_operand.hbm [shape: f32[2,8,24,256], index: 2, kind: input, shape index: {}]   ;;  %s1421_s3 = inlined_call_operand.hbm [shape: f32[2,8,24,256], index: 3, kind: output, shape index: {}]  }
   0x1   :  { %1439 = sst [smem:[#allocation23_spill]] %s1418_s0 }
   0x2   :  { %1440 = sst [smem:[#allocation24_spill]] %s1419_s1 }
   0x3   :  { %1441 = sst [smem:[#allocation25_spill]] %s1420_s2 }
   0x4   :  { %1442 = sst [smem:[#allocation26_spill]] %s1421_s3 }
   0x5   :  { %8 = vsyncpa [#allocation3], 0 }
   0x6   :  { %10 = vsyncpa [#allocation3 + $0x1], 0 }
   0x7   :  { %11 = vsyncpa [#allocation6], 0 }
   0x8   :  { %13 = vsyncpa [#allocation6 + $0x1], 0 }
   0x9   :  { %14 = vsyncpa [#allocation4], 0 }
   0xa   :  { %16 = vsyncpa [#allocation4 + $0x1], 0  ;;  %s984_s12 = smov 0   ;;  %s986_s13 = smov 0  }
   0xb   :  { %s988_s14 = smov 0   ;;  %s990_s15 = smov 0  }
   0xc   :  { %s992_s16 = smov 0   ;;  %s994_s17 = smov 0  }
   0xd   :  { %s996_s18 = smov 0   ;;  %s998_s19 = smov 0  }
   0xe   :  { %s1000_s20 = smov 0   ;;  %s1002_s21 = smov 0  }
   0xf   :  { %s1004_s22 = smov 0   ;;  %s1006_s23 = smov 0  }
  0x10   :  { %s1008_s24 = smov 0   ;;  %s1010_s25 = smov 0  }
  0x11 LB: > { %1443 = sst [smem:[#allocation13_spill]] %s918_s16  ;;  %s1055_s26 = sadd.s32 4294967295, %s954_s25   ;;  %s954_s25 = sphi %s1010_s25, %s22_s25   ;;  %s950_s24 = sphi %s1008_s24, %s1499_s24   ;;  %s946_s23 = sphi %s1006_s23, %s1498_s23   ;;  %s942_s22 = sphi %s1004_s22, %s1508_s22   ;;  %s938_s21 = sphi %s1002_s21, %s1496_s21   ;;  %s934_s20 = sphi %s1000_s20, %s1507_s20   ;;  %s930_s19 = sphi %s998_s19, %s1506_s19   ;;  %s926_s18 = sphi %s996_s18, %s1505_s18   ;;  %s922_s17 = sphi %s994_s17, %s1495_s17   ;;  %s918_s16 = sphi %s992_s16, %s1504_s16   ;;  %s914_s15 = sphi %s990_s15, %s1493_s15   ;;  %s910_s14 = sphi %s988_s14, %s1503_s14   ;;  %s906_s13 = sphi %s986_s13, %s1502_s13   ;;  %s902_s12 = sphi %s984_s12, %s1501_s12  }
  0x12   : > { %1444 = sst [smem:[#allocation14_spill]] %s922_s17  ;;  %s1058_s27 = sadd.s32 1, %s946_s23 }
  0x13   : > { %1445 = sst [smem:[#allocation15_spill]] %s938_s21  ;;  %p35_p0 = scmp.ge.s32.totalorder %s1058_s27, 8 }
  0x14   : > { %1446 = sst [smem:[#allocation16_spill]] %s942_s22  ;;  %s37_s28 = sadd.s32 1, %s950_s24 }
  0x15   : > { %1447 = sst [smem:[#allocation17_spill]] %s946_s23  ;;  %p1430_p1 = scmp.eq.s32.totalorder %s954_s25, 0 }
  0x16   : > { %1448 = sst [smem:[#allocation18_spill]] %s950_s24  ;;  %p1429_p2 = scmp.eq.s32.totalorder %s1055_s26, 0 }
  0x17   : > { %s1065_s29 = scalar_select %p35_p0, 0, %s1058_s27  }
  0x18   : > { %s1510_s28 = smov (!%p35_p0, %s37_s28), %s950_s24  ;;  %s541_s30 = sadd.s32 4294967295, %s946_s23 }
  0x19   : > { %1449 = sst [smem:[#allocation19_spill]] %s1065_s29  ;;  %s542_s4 = sadd.s32 4294967295, %s1065_s29 }
  0x1a   : > { %p39_p3 = scmp.ge.s32.totalorder %s1510_s28, 2  ;;  %p82_p4 = scmp.gt.s32.totalorder %s541_s30, 0 }
  0x1b   : > { %p85_p5 = scmp.gt.s32.totalorder %s542_s4, 0  ;;  %s94_s5 = sadd.s32 1, %s922_s17 }
  0x1c   : > { %s1512_s28 = smov (%p39_p3, %s1510_s28), 0  ;;  %s1514_s30 = smov (!%p82_p4, %s541_s30), 0 }
  0x1d   : > { %1450 = sst [smem:[#allocation20_spill]] %s1512_s28  ;;  %s1075_s6 = ssub.s32 %s950_s24, %s1512_s28 }
  0x1e   : > { %p101_p6 = scmp.ne.s32.totalorder %s922_s17, %s918_s16  ;;  %s1516_s4 = smov (!%p85_p5, %s542_s4), 0 }
  0x1f   : > { %p107_p8 = scmp.ne.s32.totalorder %s918_s16, %s914_s15  ;;  %s88_s8 = ssub.s32 %s1514_s30, %s1516_s4 }
  0x20   : > { %p1081_p7 = por %p101_p6, %p1430_p1  ;;  %s118_s9 = ssub.s32 %s946_s23, %s1065_s29 }
  0x21   : > { %s89_s10 = sor.u32 %s88_s8, %s1075_s6  ;;  %p1092_p9 = por %p107_p8, %p1429_p2 }
  0x22   : > { %p92_p10 = scmp.eq.s32.totalorder %s89_s10, 0  ;;  %s1097_s28 = sor.u32 %s118_s9, %s1075_s6 }
  0x23   : > { %s1452_s11 = scalar_select %p1092_p9, 1, 0 }
  0x24   : > { %s1101_s3 = scalar_select %p92_p10, %s922_s17, %s94_s5  }
  0x25   : > { %1453 = sst [smem:[#allocation21_spill]] %s1452_s11  ;;  %p1428_p12 = scmp.lt.s32.totalorder %s954_s25, 16 }
  0x26   : > { %1454 = sst [smem:[#allocation22_spill]] %s1101_s3  ;;  %s1105_s15 = smul.u32 48, %s950_s24 }
  0x27   : > { %s217_s4 = sand.u32 1, %s954_s25   ;;  %s219_s8 = sand.u32 1, %s922_s17  }
  0x28   : > { %s547_s22 = sshll.u32 %s219_s8, 4  ;;  %s431_s21 = smul.u32 6, %s1514_s30 }
  0x29   : > { %s221_s16 = scalar_lea.vmem [#allocation5], %s547_s22  ;;  %p1113_p13 = pnand %p1428_p12, %p1081_p7 }
  0x2a   : > { %s237_s2 = sshll.u32 %s221_s16, 4  ;;  %s434_s5 = sadd.s32 %s1105_s15, %s431_s21  ;;  %s1118_s2 = int_to_ptr.vmem [resolvable:$true] %s237_s2 }
  0x2b   : > { %s549_s10 = sshll.u32 %s434_s5, 7  ;;  %s1456_s1 = sld [smem:[#allocation24_spill]] }
  0x2c   : > { %s1127_s16 = scalar_lea.sflag [#allocation6], %s217_s4  ;;  %p710_p5 = pneg %p1113_p13 }
  0x31   : > { %s436_s17 = scalar_lea.hbm %s1456_s1, %s549_s10  ;;  %s713_s24 = scalar_lea.hbm %s1456_s1, 12288 }
  0x32   : > { %s1124_s30 = scalar_lea.hbm %s436_s17, 256  ;;  %s738_s22 = scalar_lea.hbm %s436_s17, 512 }
  0x33   : > { %p709_p4 = scmp.ne.s32.totalorder %s1124_s30, %s738_s22  ;;  %p714_p8 = scmp.lt.u32.totalorder %s1124_s30, %s1456_s1 }
  0x34   : > { %p715_p10 = scmp.lt.u32.totalorder %s713_s24, %s738_s22  ;;  %p717_p12 = scmp.lt.u32.totalorder %s738_s22, %s1124_s30 }
  0x35   : > { %p711_p6 = pnand %p710_p5, %p709_p4 }
  0x36   : > { %p716_p11 = por %p715_p10, %p714_p8 }
  0x37   : > { %p712_p7 = pneg %p711_p6 }
  0x38   : > { %p718_p2 = por %p717_p12, %p716_p11 }
  0x3a   : > { %p719_p1 = pnand %p718_p2, %p712_p7 }
  0x3c   : > { %722 = shalt.err (!%p719_p1)
}
  0x3d   : > { %s723_s17 = scalar_lea.vmem %s1118_s2, 256  ;;  %s956_s4 = smov [#allocation5]  }
  0x3e   : > { %p724_p4 = scmp.ne.s32.totalorder %s1118_s2, %s723_s17  ;;  %s728_s5 = sshll.u32 %s956_s4, 4  ;;  %s729_s5 = int_to_ptr.vmem [resolvable:$false] %s728_s5 }
  0x3f   : > { %s730_s10 = scalar_lea.vmem %s729_s5, 512  ;;  %p731_p3 = scmp.lt.s32.totalorder %s1118_s2, %s729_s5 }
  0x40   : > { %p726_p6 = pnand %p724_p4, %p710_p5  ;;  %p732_p8 = scmp.lt.s32.totalorder %s730_s10, %s723_s17 }
  0x42   : > { %p727_p0 = pneg %p726_p6  ;;  %p733_p10 = por %p732_p8, %p731_p3 }
  0x44   : > { %p734_p11 = pnand %p733_p10, %p727_p0 }
  0x46   : > { %737 = shalt.err (!%p734_p11)
}
  0x47   : > { %582 = dma.hbm_to_vmem [thread:$0]  (!%p1113_p13), %s1124_s30, 256, %s1118_s2, %s1127_s16  }
  0x48   : > { %p1457_p1 = scmp.lt.s32.totalorder %s954_s25, 17  ;;  %p1458_p2 = scmp.ge.s32.totalorder %s954_s25, 1 }
  0x49   : > { %p46_p0 = scmp.lt.s32.totalorder %s1058_s27, 7  ;;  %s48_s22 = sadd.s32 1, %s1065_s29 }
  0x4a   : > { %p1158_p12 = pnand %p1458_p2, %p1457_p1  ;;  %s58_s21 = sadd.s32 1, %s934_s20 }
  0x4b   : > { %s1518_s27 = smov (!%p46_p0, %s1058_s27), 7  ;;  %p49_p3 = scmp.lt.s32.totalorder %s48_s22, 7 }
  0x4c   : > { %p65_p5 = scmp.ne.s32.totalorder %s934_s20, %s930_s19  ;;  %p71_p7 = scmp.ne.s32.totalorder %s930_s19, %s926_s18 }
  0x4d   : > { %s191_s3 = sand.u32 1, %s934_s20   ;;  %s1520_s22 = smov (!%p49_p3, %s48_s22), 7 }
  0x4e   : > { %p1460_p4 = scmp.eq.s32.totalorder %s954_s25, 0  ;;  %p1462_p6 = scmp.eq.s32.totalorder %s1055_s26, 0 }
  0x4f   : > { %s52_s24 = ssub.s32 %s1518_s27, %s1520_s22  ;;  %s545_s8 = sshll.u32 %s191_s3, 4 }
  0x50   : > { %p1173_p13 = por %p1460_p4, %p65_p5  ;;  %p1179_p8 = por %p1462_p6, %p71_p7 }
  0x51   : > { %s53_s7 = sor.u32 %s52_s24, %s1075_s6  ;;  %s563_s17 = smul.u32 6, %s1518_s27 }
  0x52   : > { %s1463_s30 = scalar_select %p1179_p8, 1, 0 }
  0x53   : > { %p56_p10 = scmp.eq.s32.totalorder %s53_s7, 0  ;;  %s195_s18 = scalar_lea.vmem [#allocation2], %s545_s8 }
  0x54   : > { %s210_s4 = sshll.u32 %s195_s18, 4  ;;  %s206_s10 = sadd.s32 %s1105_s15, %s563_s17  ;;  %s1188_s4 = int_to_ptr.vmem [resolvable:$true] %s210_s4 }
  0x55   : > { %s1185_s5 = scalar_select %p56_p10, %s934_s20, %s58_s21  }
  0x56   : > { %s546_s1 = sshll.u32 %s206_s10, 7  ;;  %p1464_p11 = scmp.lt.s32.totalorder %s954_s25, 16 }
  0x57   : > { %s1466_s0 = sld [smem:[#allocation23_spill]]  ;;  %s192_s6 = scalar_lea.sflag [#allocation3], %s191_s3 }
  0x58   : > { %p1194_p1 = pnand %p1464_p11, %p1173_p13 }
  0x5a   : > { %p741_p0 = pneg %p1194_p1 }
  0x5d   : > { %s1201_s27 = scalar_lea.hbm %s1466_s0, %s546_s1  ;;  %s744_s11 = scalar_lea.hbm %s1466_s0, 12288 }
  0x5e   : > { %s739_s21 = scalar_lea.hbm %s1201_s27, 256  ;;  %p745_p7 = scmp.lt.u32.totalorder %s1201_s27, %s1466_s0 }
  0x5f   : > { %p740_p2 = scmp.ne.s32.totalorder %s1201_s27, %s739_s21  ;;  %p746_p4 = scmp.lt.u32.totalorder %s744_s11, %s739_s21 }
  0x60   : > { %p748_p6 = scmp.lt.u32.totalorder %s739_s21, %s1201_s27 }
  0x61   : > { %p742_p3 = pnand %p741_p0, %p740_p2  ;;  %p747_p13 = por %p746_p4, %p745_p7 }
  0x63   : > { %p743_p5 = pneg %p742_p3  ;;  %p749_p10 = por %p748_p6, %p747_p13 }
  0x65   : > { %p750_p11 = pnand %p749_p10, %p743_p5 }
  0x67   : > { %753 = shalt.err (!%p750_p11)
}
  0x68   : > { %s754_s3 = scalar_lea.vmem %s1188_s4, 256  ;;  %s957_s8 = smov [#allocation2]  }
  0x69   : > { %p755_p2 = scmp.ne.s32.totalorder %s1188_s4, %s754_s3  ;;  %s759_s17 = sshll.u32 %s957_s8, 4  ;;  %s760_s17 = int_to_ptr.vmem [resolvable:$false] %s759_s17 }
  0x6a   : > { %s761_s18 = scalar_lea.vmem %s760_s17, 512  ;;  %p762_p8 = scmp.lt.s32.totalorder %s1188_s4, %s760_s17 }
  0x6b   : > { %p757_p3 = pnand %p755_p2, %p741_p0  ;;  %p763_p7 = scmp.lt.s32.totalorder %s761_s18, %s754_s3 }
  0x6d   : > { %p758_p9 = pneg %p757_p3  ;;  %p764_p4 = por %p763_p7, %p762_p8 }
  0x6f   : > { %p765_p13 = pnand %p764_p4, %p758_p9 }
  0x71   : > { %768 = shalt.err (!%p765_p13)
}
  0x72   : > { %579 = dma.hbm_to_vmem [thread:$0]  (!%p1194_p1), %s1201_s27, 256, %s1188_s4, %s192_s6  }
  0x73   : > { %s540_s10 = sadd.s32 4294967294, %s954_s25   ;;  %s124_s29 = sadd.s32 1, %s910_s14 }
  0x74   : > { %p1467_p9 = scmp.eq.s32.totalorder %s1097_s28, 0  ;;  %p131_p8 = scmp.ne.s32.totalorder %s910_s14, %s906_s13 }
  0x75   : > { %p137_p0 = scmp.ne.s32.totalorder %s906_s13, %s902_s12  ;;  %p165_p5 = scmp.eq.s32.totalorder %s1055_s26, 15 }
  0x76   : > { %s1233_s22 = scalar_select %p1467_p9, %s910_s14, %s124_s29  }
  0x77   : > { %p171_p6 = scmp.eq.s32.totalorder %s540_s10, 15  ;;  %p1468_p10 = scmp.eq.s32.totalorder %s954_s25, 0 }
  0x78   : > { %p1469_p2 = scmp.eq.s32.totalorder %s1055_s26, 0  ;;  %p1248_p7 = por %p165_p5, %p131_p8 }
  0x79   : > { %p133_p11 = por %p131_p8, %p1468_p10  ;;  %p1252_p1 = por %p171_p6, %p137_p0 }
  0x7a   : > { %p1244_p3 = por %p137_p0, %p1469_p2  ;;  %s246_s28 = sand.u32 1, %s910_s14  }
  0x7b   : > { %s1471_s2 = scalar_select %p1248_p7, 1, 0 }
  0x7c   : > { %s1470_s21 = scalar_select %p1244_p3, 1, 0 }
  0x7d   : > { %s1472_s4 = scalar_select %p1252_p1, 1, 0 }
  0x7e   : > { %s442_s27 = smul.u32 6, %s946_s23  ;;  %s550_s6 = sshll.u32 %s246_s28, 4 }
  0x7f   : > { %p1473_p4 = scmp.lt.s32.totalorder %s954_s25, 16  ;;  %s248_s1 = scalar_lea.vmem [#allocation7], %s550_s6 }
  0x80   : > { %s445_s11 = sadd.s32 %s1105_s15, %s442_s27  ;;  %s261_s3 = sshll.u32 %s248_s1, 4  ;;  %s1268_s3 = int_to_ptr.vmem [resolvable:$true] %s261_s3 }
  0x81   : > { %p1260_p13 = pnand %p1473_p4, %p133_p11  ;;  %s551_s7 = sshll.u32 %s445_s11, 7 }
  0x82   : > { %s1475_s18 = sld [smem:[#allocation25_spill]] }
  0x83   : > { %p771_p8 = pneg %p1260_p13 }
  0x88   : > { %s1476_s10 = smov %s1475_s18  ;;  %s447_s29 = scalar_lea.hbm %s1475_s18, %s551_s7 }
  0x89   : > { %s448_s0 = scalar_lea.hbm %s447_s29, 512  ;;  %s799_s23 = scalar_lea.hbm %s447_s29, 768 }
  0x8a   : > { %p770_p9 = scmp.ne.s32.totalorder %s448_s0, %s799_s23  ;;  %s774_s27 = scalar_lea.hbm %s1476_s10, 12288 }
  0x8b   : > { %p775_p6 = scmp.lt.u32.totalorder %s448_s0, %s1476_s10  ;;  %p776_p10 = scmp.lt.u32.totalorder %s774_s27, %s799_s23 }
  0x8c   : > { %p772_p0 = pnand %p771_p8, %p770_p9  ;;  %p778_p2 = scmp.lt.u32.totalorder %s799_s23, %s448_s0 }
  0x8d   : > { %p777_p11 = por %p776_p10, %p775_p6 }
  0x8e   : > { %p773_p5 = pneg %p772_p0 }
  0x8f   : > { %p779_p4 = por %p778_p2, %p777_p11 }
  0x91   : > { %p780_p1 = pnand %p779_p4, %p773_p5 }
  0x93   : > { %783 = shalt.err (!%p780_p1)
}
  0x94   : > { %s784_s7 = scalar_lea.vmem %s1268_s3, 256  ;;  %s958_s1 = smov [#allocation7]  }
  0x95   : > { %p785_p9 = scmp.ne.s32.totalorder %s1268_s3, %s784_s7  ;;  %s789_s8 = sshll.u32 %s958_s1, 4  ;;  %s790_s8 = int_to_ptr.vmem [resolvable:$false] %s789_s8 }
  0x96   : > { %s791_s17 = scalar_lea.vmem %s790_s8, 512  ;;  %p792_p3 = scmp.lt.s32.totalorder %s1268_s3, %s790_s8 }
  0x97   : > { %p787_p0 = pnand %p785_p9, %p771_p8  ;;  %p793_p6 = scmp.lt.s32.totalorder %s791_s17, %s784_s7 }
  0x99   : > { %p788_p7 = pneg %p787_p0  ;;  %p794_p10 = por %p793_p6, %p792_p3 }
  0x9b   : > { %p795_p11 = pnand %p794_p10, %p788_p7 }
  0x9d   : > { %798 = shalt.err (!%p795_p11)
}
  0x9e   : > { %585 = dma.hbm_to_vmem [thread:$0]  (!%p1260_p13), %s448_s0, 256, %s1268_s3, %s1127_s16  }
  0x9f   : > { %270 = sbr.rel (%p1158_p12) target bundleno = 270 (0x10e), region = 32  ;;  %s272_s23 = sand.u32 (!%p1158_p12), 1, %s930_s19  }
  0xa0   : > { %s553_s18 = sshll.u32 (!%p1158_p12), %s272_s23, 4  ;;  %s273_s29 = scalar_lea.sflag (!%p1158_p12), [#allocation3], %s272_s23 }
  0xa1   : > { %s276_s28 = scalar_lea.vmem (!%p1158_p12), [#allocation2], %s553_s18  ;;  %p1477_p1 = scmp.ne.s32.totalorder (!%p1158_p12), %s1463_s30, 0 }
  0xa6   : > { %885 = dma.done.wait (%p1477_p1), %s273_s29, 256  }
  0xa7   : > { %887 = vsyncadd (%p1477_p1), %s273_s29, 4294967040  ;;  %s1478_s15 = sld [smem:[#allocation13_spill]]  ;;  %s1479_s24 = sld [smem:[#allocation21_spill]] }
  0xa8   : > { %s281_s27 = sand.u32 1, %s1055_s26  }
  0xa9   : > { %s282_s16 = scalar_lea.sflag [#allocation6], %s281_s27 }
  0xad   : > { %s283_s6 = sand.u32 1, %s1478_s15   ;;  %p1480_p12 = scmp.ne.s32.totalorder %s1479_s24, 0 }
  0xae   : > { %s1300_s0 = sshll.u32 %s283_s6, 4 }
  0xaf   : > { %s285_s9 = scalar_lea.vmem [#allocation5], %s1300_s0 }
  0xb0   : > { %889 = dma.done.wait (%p1480_p12), %s282_s16, 256  }
  0xb1   : > { %891 = vsyncadd (%p1480_p12), %s282_s16, 4294967040  ;;  %s1308_s3 = sand.u32 1, %s906_s13   ;;  %p1481_p3 = scmp.ne.s32.totalorder %s1470_s21, 0 }
  0xb2   : > { %s555_s30 = sshll.u32 %s1308_s3, 4 }
  0xb3   : > { %s294_s11 = scalar_lea.vmem [#allocation7], %s555_s30 }
  0xb4   : > { %893 = dma.done.wait (%p1481_p3), %s282_s16, 256  }
  0xb5   : > { %895 = vsyncadd (%p1481_p3), %s282_s16, 4294967040  ;;  %s565_s26 = smul.u32 48, %s1308_s3  ;;  %v337_v0 = vld [vmem:[%s294_s11] sm:$0xff]  ;;  %v338_v1 = vld [vmem:[%s294_s11 + $0x8] sm:$0xff]  ;;  %s1482_s1 = sld [smem:[#allocation15_spill]] }
  0xb7   : > { %s1316_s7 = scalar_lea.vmem [#allocation8], %s565_s26 }
  0xb8   : > { %339 = vst [vmem:[%s1316_s7 + $0x20] sm:$0xff] %v337_v0  ;;  %340 = vst [vmem:[%s1316_s7 + $0x28] sm:$0xff] %v338_v1 }
  0xbb   : > { %p556_p7 = scmp.ge.s32.totalorder %s1482_s1, 7 }
  0xbc   : > { %v345_v2 = vld [vmem:[%s276_s28] sm:$0xff] (!%p556_p7)  ;;  %v346_v3 = vld [vmem:[%s276_s28 + $0x8] sm:$0xff] (!%p556_p7) }
  0xbd   : > { %344 = sbr.rel (%p556_p7) target bundleno = 196 (0xc4), region = 48  ;;  %347 = vst [vmem:[%s1316_s7] sm:$0xff] (!%p556_p7), %v345_v2  ;;  %348 = vst [vmem:[%s1316_s7 + $0x8] sm:$0xff] (!%p556_p7), %v346_v3 }
  0xc4 PF: > { %s1483_s21 = sld [smem:[#allocation15_spill]] }
  0xca   : > { %p557_p13 = scmp.ne.s32.totalorder %s1483_s21, 7 }
  0xcb   : > { %v959_v4 = vmov (!%p557_p13), 0.0  }
  0xcc   : > { %352 = sbr.rel (%p557_p13) target bundleno = 211 (0xd3), region = 52  ;;  %353 = vst [vmem:[%s1316_s7] sm:$0xff] (!%p557_p13), %v959_v4  ;;  %354 = vst [vmem:[%s1316_s7 + $0x8] sm:$0xff] (!%p557_p13), %v959_v4 }
  0xd3 PF: > { %s1484_s8 = sld [smem:[#allocation15_spill]] }
  0xd9   : > { %p558_p8 = scmp.le.s32.totalorder %s1484_s8, 0 }
  0xda   : > { %v359_v5 = vld [vmem:[%s285_s9] sm:$0xff] (!%p558_p8)  ;;  %v360_v6 = vld [vmem:[%s285_s9 + $0x8] sm:$0xff] (!%p558_p8) }
  0xdb   : > { %358 = sbr.rel (%p558_p8) target bundleno = 226 (0xe2), region = 56  ;;  %361 = vst [vmem:[%s1316_s7 + $0x10] sm:$0xff] (!%p558_p8), %v359_v5  ;;  %362 = vst [vmem:[%s1316_s7 + $0x18] sm:$0xff] (!%p558_p8), %v360_v6 }
  0xe2 PF: > { %s1485_s17 = sld [smem:[#allocation15_spill]] }
  0xe8   : > { %p559_p5 = scmp.ne.s32.totalorder %s1485_s17, 0 }
  0xe9   : > { %v960_v7 = vmov (!%p559_p5), 0.0  }
  0xea   : > { %366 = sbr.rel (%p559_p5) target bundleno = 241 (0xf1), region = 60  ;;  %367 = vst [vmem:[%s1316_s7 + $0x10] sm:$0xff] (!%p559_p5), %v960_v7  ;;  %368 = vst [vmem:[%s1316_s7 + $0x18] sm:$0xff] (!%p559_p5), %v960_v7 }
  0xf1 PF: > { %s1486_s23 = sld [smem:[#allocation15_spill]]  ;;  %s1487_s18 = sld [smem:[#allocation16_spill]] }
  0xf2   : > { %s387_s15 = sshll.u32 %s1316_s7, 4  ;;  %s1488_s16 = sld [smem:[#allocation26_spill]]  ;;  %s1335_s15 = int_to_ptr.vmem [resolvable:$true] %s387_s15 }
  0xf3   : > { %s370_s11 = scalar_lea.sflag [#allocation4], %s1308_s3  ;;  %s800_s26 = scalar_lea.vmem %s1335_s15, 768 }
  0xf4   : > { %p801_p2 = scmp.ne.s32.totalorder %s1335_s15, %s800_s26  ;;  %p1490_p4 = scmp.ne.s32.totalorder %s1471_s2, 0 }
  0xf5   : > { %s961_s1 = smov [#allocation8]  }
  0xf6   : > { %p802_p9 = pnand %p801_p2, %p1490_p4  ;;  %s804_s7 = sshll.u32 %s961_s1, 4  ;;  %s805_s7 = int_to_ptr.vmem [resolvable:$false] %s804_s7 }
  0xf7   : > { %s566_s29 = smul.u32 6, %s1486_s23  ;;  %s806_s21 = scalar_lea.vmem %s805_s7, 1536 }
  0xf8   : > { %s567_s28 = smul.u32 48, %s1487_s18  ;;  %s1489_s9 = smov %s1488_s16 }
  0xf9   : > { %p803_p0 = pneg %p802_p9  ;;  %p807_p6 = scmp.lt.s32.totalorder %s1335_s15, %s805_s7 }
  0xfa   : > { %s384_s24 = sadd.s32 %s567_s28, %s566_s29  ;;  %p808_p10 = scmp.lt.s32.totalorder %s806_s21, %s800_s26 }
  0xfb   : > { %s560_s27 = sshll.u32 %s384_s24, 7 }
  0xfc   : > { %s1340_s30 = scalar_lea.hbm %s1488_s16, %s560_s27  ;;  %p809_p11 = por %p808_p10, %p807_p6 }
  0xfe   : > { %p810_p1 = pnand %p809_p11, %p803_p0 }
 0x100   : > { %813 = shalt.err (!%p810_p1)
}
 0x101   : > { %s814_s8 = scalar_lea.hbm %s1340_s30, 768  ;;  %s818_s18 = scalar_lea.hbm %s1489_s9, 12288 }
 0x102   : > { %p815_p12 = scmp.ne.s32.totalorder %s1340_s30, %s814_s8  ;;  %p819_p13 = scmp.lt.u32.totalorder %s1340_s30, %s1489_s9 }
 0x103   : > { %p820_p8 = scmp.lt.u32.totalorder %s818_s18, %s814_s8  ;;  %p822_p2 = scmp.lt.u32.totalorder %s814_s8, %s1340_s30 }
 0x104   : > { %p816_p3 = pnand %p815_p12, %p1490_p4 }
 0x105   : > { %p821_p5 = por %p820_p8, %p819_p13 }
 0x106   : > { %p817_p7 = pneg %p816_p3 }
 0x107   : > { %p823_p9 = por %p822_p2, %p821_p5 }
 0x109   : > { %p824_p0 = pnand %p823_p9, %p817_p7 }
 0x10b   : > { %827 = shalt.err (!%p824_p0)
}
 0x10c   : > { %s962_s24 = smov 256   ;;  %s963_s27 = smov 16  }
 0x10d   : > { %574 = dma.vmem_to_hbm [thread:$0]  (%p1490_p4), %s1335_s15, 768, %s1340_s30, %s370_s11, %s962_s24, %s962_s24, %s963_s27  }
 0x10e PF: > { %p591_p6 = scmp.ge.s32.totalorder %s954_s25, 2  ;;  %s402_s6 = sand.u32 1, %s902_s12  }
 0x10f   : > { %p1491_p10 = scmp.ne.s32.totalorder %s1472_s4, 0  ;;  %s403_s0 = scalar_lea.sflag [#allocation4], %s402_s6 }
 0x111   : > { %p587_p11 = pnand %p591_p6, %p1491_p10 }
 0x113   : > { %897 = dma.done.wait (!%p587_p11), %s403_s0, 768  }
 0x114   : > { %899 = vsyncadd (!%p587_p11), %s403_s0, 4294966528  ;;  %s22_s25 = sadd.s32 1, %s954_s25   ;;  %s1493_s15 = sld [smem:[#allocation13_spill]] }
 0x115   : > { %p1371_p1 = scmp.ge.s32.totalorder %s22_s25, 18   ;;  %s1494_s2 = sld [smem:[#allocation14_spill]] }
 0x116   : > { %s1495_s17 = sld [smem:[#allocation22_spill]]  ;;  %s1496_s21 = sld [smem:[#allocation17_spill]] }
 0x117   : > { %s1497_s4 = sld [smem:[#allocation18_spill]]  ;;  %s1498_s23 = sld [smem:[#allocation19_spill]] }
 0x118   : > { %s1499_s24 = sld [smem:[#allocation20_spill]]  ;;  %s1501_s12 = smov %s906_s13 }
 0x119   : > { %s1502_s13 = smov %s910_s14  ;;  %s1503_s14 = smov %s1233_s22 }
 0x11a   : > { %s1505_s18 = smov %s930_s19  ;;  %s1506_s19 = smov %s934_s20 }
 0x11b   : > { %s1504_s16 = smov %s1494_s2  ;;  %s1507_s20 = smov %s1185_s5 }
 0x11c   :  { %21 = sbr.rel (!%p1371_p1) target bundleno = 17 (0x11), region = 117 }
 0x11d   : > { %s1508_s22 = smov %s1497_s4 }
 0x123   :  { %408 = vsyncpa [#allocation3], 1 }
 0x124   :  { %410 = vsyncpa [#allocation3 + $0x1], 1 }
 0x125   :  { %411 = vsyncpa [#allocation6], 1 }
 0x126   :  { %413 = vsyncpa [#allocation6 + $0x1], 1 }
 0x127   :  { %414 = vsyncpa [#allocation4], 1 }
 0x128   :  { %416 = vsyncpa [#allocation4 + $0x1], 1 }

</bundles_post_ra>
